<compile_context>
chip_gen: v5e
topology: v5e:2x2
jax: 0.10.0
libtpu: 0.0.40
codegen_flags: <defaults>
</compile_context>

<pallas_src>
import math
from functools import partial

import jax
import jax.numpy as jnp
from jax.experimental import pallas as pl
from jax.experimental.pallas import tpu as pltpu


def _round_up(x, m):
    return (x + m - 1) // m * m


def _gce_block_kernel(yhat_ref, y_ref, out_ref, *, alpha, batch, needs_mask):
    """Per-block un-normalized GCE contribution; batch on the lane axis."""
    c, tb = yhat_ref.shape

    logits = yhat_ref[...].astype(jnp.float32)            # (C, TB)
    y = y_ref[...]                                        # (1, TB) int32

    # Softmax stats along the class (sublane) axis.
    m = jnp.max(logits, axis=0, keepdims=True)            # (1, TB)
    z = logits - m                                        # (C, TB)
    e = jnp.exp(z)                                        # (C, TB)  -- only full-width EUP op
    den = jnp.sum(e, axis=0, keepdims=True)               # (1, TB)

    # One-hot label mask: sublane iota vs broadcast labels.
    row_ids = jax.lax.broadcasted_iota(jnp.int32, (c, tb), 0)
    is_label = row_ids == y                                # (C, TB) bool

    # Yg = p[label] without materializing p; exact per-row divides (cheap now).
    e_label = jnp.sum(jnp.where(is_label, e, 0.0), axis=0, keepdims=True)
    Yg = e_label / den                                     # (1, TB)
    Yg_ = 1.0 - Yg + 1e-07                                 # (1, TB)
    # (Yg + 1e-7) ** alpha  (base is strictly positive)
    guided_factor = jnp.exp(alpha * jnp.log(Yg + 1e-07))   # (1, TB)

    den_yg = den * Yg_                                     # (1, TB)
    inv_den_yg = 1.0 / den_yg                              # (1, TB)
    log_row = jnp.log(den_yg)                              # single per-row log

    # Px = p / Yg_ = e / (den * Yg_); log(Px + 1e-10) ~= log(Px) = z - log_row.
    # (Epsilon dropped: where Px ~ 0 the product Px*log(.) -> 0 either way.)
    Px = e * inv_den_yg                                    # (C, TB)
    contrib = jnp.where(is_label, 0.0, Px * (z - log_row))  # (C, TB), label col = 0
    col_sum = jnp.sum(contrib, axis=0, keepdims=True)      # (1, TB)
    guided = guided_factor * col_sum                        # (1, TB)

    if needs_mask:
        # Only emitted when the padded batch exceeds the true batch.
        base = pl.program_id(0) * tb
        col_ids = jax.lax.broadcasted_iota(jnp.int32, (1, tb), 1) + base
        guided = jnp.where(col_ids < batch, guided, 0.0)

    out_ref[...] = guided


def guided_complement_entropy(yhat, y, alpha=0.333, classes=10, block_cols=4096):
    """yhat: (B, classes) float logits (any float dtype), y: (B,) ints -> f32 scalar loss."""
    B, C = yhat.shape
    assert C == classes

    # Batch-in-lanes layout.
    yhat_t = jnp.transpose(yhat)                      # (C, B), native dtype
    y2d = y.astype(jnp.int32).reshape(1, B)           # (1, B)

    # Generation-aware VMEM budget (v7x: 64 MiB per TC, v5e/v6e: 128 MiB).
    try:
        vmem_cap = int(pltpu.get_tpu_info().vmem_capacity_bytes)
    except Exception:
        vmem_cap = 64 << 20                           # conservative (v7x) fallback
    budget = min(vmem_cap // 2, 48 << 20)

    itemsize = yhat.dtype.itemsize
    c_pad = _round_up(C, 8)
    # Padding-aware per-batch-column byte estimate:
    per_col = (2 * c_pad * itemsize                   # double-buffered logits tile
               + 2 * 8 * 4                            # double-buffered label tile (8-sublane pad)
               + 2 * 8 * 4                            # double-buffered output tile
               + 8 * c_pad * 4)                       # f32 temporaries (e, Px, contrib, ...)

    b_pad128 = _round_up(B, 128)
    tb_vmem = max(128, (budget // per_col) // 128 * 128)
    tb = min(block_cols, tb_vmem, b_pad128)
    if tb >= b_pad128 and b_pad128 >= 256:
        # Ensure >= 2 parallel blocks so v7x's two TensorCores both get work.
        tb = _round_up(b_pad128 // 2, 128)

    B_padded = _round_up(B, tb)
    num_blocks = B_padded // tb
    if B_padded != B:
        pad = B_padded - B
        yhat_t = jnp.pad(yhat_t, ((0, 0), (0, pad)))
        y2d = jnp.pad(y2d, ((0, 0), (0, pad)))

    vmem_limit = int(min(max(per_col * tb + (2 << 20), 4 << 20),
                         max(vmem_cap - (8 << 20), 4 << 20)))

    partials = pl.pallas_call(
        partial(_gce_block_kernel, alpha=float(alpha), batch=B,
                needs_mask=(B_padded != B)),
        out_shape=jax.ShapeDtypeStruct((1, B_padded), jnp.float32),
        grid=(num_blocks,),
        in_specs=[
            pl.BlockSpec((C, tb), lambda i: (0, i)),   # logits tile, class on sublanes
            pl.BlockSpec((1, tb), lambda i: (0, i)),   # label row
        ],
        out_specs=pl.BlockSpec((1, tb), lambda i: (0, i)),  # lane-dense per-column loss
        compiler_params=pltpu.CompilerParams(
            dimension_semantics=("parallel",),
            vmem_limit_bytes=vmem_limit,
        ),
    )(yhat_t, y2d)

    # Contiguous lane-dense reduction; both normalizations folded into one constant.
    norm = 1.0 / (float(B) * math.log(float(classes)))
    return jnp.sum(partials) * jnp.float32(norm)


def _reference(yhat, y, alpha=0.333, classes=10):
    # Pure-JAX reference mirroring the PyTorch module.
    B = y.shape[0]
    p = jax.nn.softmax(yhat.astype(jnp.float32), axis=1)
    Yg = jnp.take_along_axis(p, y[:, None], axis=1)
    Yg_ = 1.0 - Yg + 1e-07
    guided_factor = (Yg + 1e-07) ** alpha
    Px = p / Yg_
    Px_log = jnp.log(Px + 1e-10)
    zerohot = 1.0 - jax.nn.one_hot(y, classes, dtype=p.dtype)
    output = Px * Px_log * zerohot
    guided_output = jnp.squeeze(guided_factor, 1) * jnp.sum(output, axis=1)
    return jnp.sum(guided_output) / float(B) / math.log(float(classes))


if __name__ == "__main__":
    key = jax.random.PRNGKey(0)
    k1, k2 = jax.random.split(key)
    B, C = 8, 10
    alpha = 0.333

    yhat = jax.random.normal(k1, (B, C), dtype=jnp.float32)
    y = jax.random.randint(k2, (B,), 0, C, dtype=jnp.int32)

    loss = guided_complement_entropy(yhat, y, alpha=alpha, classes=C)
    loss = jax.block_until_ready(loss)

    ref = _reference(yhat, y, alpha=alpha, classes=C)
    # Divides are exact; the only deliberate deviation is dropping the 1e-10
    # inside the log via the log-domain identity (negligible for contributing
    # terms), so a modest tolerance is enough.
    assert jnp.allclose(loss, ref, rtol=1e-3, atol=1e-5), (loss, ref)

    print("KERNEL_OK")
</pallas_src>

<mosaic_0001>
module attributes {stable_mosaic.version = 11 : i64} {
  func.func @_gce_block_kernel(%arg0: i32, %arg1: memref<10x128xf32, #tpu.memory_space<vmem>>, %arg2: memref<1x128xi32, #tpu.memory_space<vmem>>, %arg3: memref<1x128xf32, #tpu.memory_space<vmem>>) attributes {dimension_semantics = [#tpu.dimension_semantics<parallel>], iteration_bounds = array<i64: 1>, scalar_prefetch = 0 : i64, scratch_operands = 0 : i64, tpu.core_type = #tpu.core_type<tc>, window_params = [{transform_indices = @transform_0, window_bounds = array<i64: 10, 128>}, {transform_indices = @transform_1, window_bounds = array<i64: 1, 128>}, {transform_indices = @transform_2, window_bounds = array<i64: 1, 128>}]} {
    %c0 = arith.constant 0 : index
    %c0_0 = arith.constant 0 : index
    %0 = vector.load %arg1[%c0, %c0_0] : memref<10x128xf32, #tpu.memory_space<vmem>>, vector<10x128xf32>
    %c0_1 = arith.constant 0 : index
    %c0_2 = arith.constant 0 : index
    %1 = vector.load %arg2[%c0_1, %c0_2] : memref<1x128xi32, #tpu.memory_space<vmem>>, vector<1x128xi32>
    %cst = arith.constant dense<0xFF800000> : vector<128xf32>
    %2 = vector.multi_reduction <maximumf>, %0, %cst [0] : vector<10x128xf32> to vector<128xf32>
    %3 = vector.shape_cast %2 : vector<128xf32> to vector<1x128xf32>
    %4 = vector.broadcast %3 : vector<1x128xf32> to vector<10x128xf32>
    %5 = arith.subf %0, %4 : vector<10x128xf32>
    %6 = math.exp %5 : vector<10x128xf32>
    %cst_3 = arith.constant dense<0.000000e+00> : vector<128xf32>
    %7 = vector.multi_reduction <add>, %6, %cst_3 [0] : vector<10x128xf32> to vector<128xf32>
    %8 = vector.shape_cast %7 : vector<128xf32> to vector<1x128xf32>
    %9 = tpu.iota {dimensions = array<i32: 0>} : vector<10x128xi32>
    %10 = vector.broadcast %1 : vector<1x128xi32> to vector<10x128xi32>
    %11 = arith.cmpi eq, %9, %10 : vector<10x128xi32>
    %cst_4 = arith.constant 0.000000e+00 : f32
    %12 = vector.broadcast %cst_4 : f32 to vector<10x128xf32>
    %13 = arith.select %11, %6, %12 : vector<10x128xi1>, vector<10x128xf32>
    %cst_5 = arith.constant dense<0.000000e+00> : vector<128xf32>
    %14 = vector.multi_reduction <add>, %13, %cst_5 [0] : vector<10x128xf32> to vector<128xf32>
    %15 = vector.shape_cast %14 : vector<128xf32> to vector<1x128xf32>
    %16 = arith.divf %15, %8 : vector<1x128xf32>
    %cst_6 = arith.constant 1.000000e+00 : f32
    %17 = vector.broadcast %cst_6 : f32 to vector<1x128xf32>
    %18 = arith.subf %17, %16 : vector<1x128xf32>
    %cst_7 = arith.constant 1.000000e-07 : f32
    %19 = vector.broadcast %cst_7 : f32 to vector<1x128xf32>
    %20 = arith.addf %18, %19 : vector<1x128xf32>
    %cst_8 = arith.constant 1.000000e-07 : f32
    %21 = vector.broadcast %cst_8 : f32 to vector<1x128xf32>
    %22 = arith.addf %16, %21 : vector<1x128xf32>
    %23 = math.log %22 : vector<1x128xf32>
    %cst_9 = arith.constant 3.330000e-01 : f32
    %24 = vector.broadcast %cst_9 : f32 to vector<1x128xf32>
    %25 = arith.mulf %24, %23 : vector<1x128xf32>
    %26 = math.exp %25 : vector<1x128xf32>
    %27 = arith.mulf %8, %20 : vector<1x128xf32>
    %cst_10 = arith.constant 1.000000e+00 : f32
    %28 = vector.broadcast %cst_10 : f32 to vector<1x128xf32>
    %29 = arith.divf %28, %27 : vector<1x128xf32>
    %30 = math.log %27 : vector<1x128xf32>
    %31 = vector.broadcast %29 : vector<1x128xf32> to vector<10x128xf32>
    %32 = arith.mulf %6, %31 : vector<10x128xf32>
    %33 = vector.broadcast %30 : vector<1x128xf32> to vector<10x128xf32>
    %34 = arith.subf %5, %33 : vector<10x128xf32>
    %35 = arith.mulf %32, %34 : vector<10x128xf32>
    %cst_11 = arith.constant 0.000000e+00 : f32
    %36 = vector.broadcast %cst_11 : f32 to vector<10x128xf32>
    %37 = arith.select %11, %36, %35 : vector<10x128xi1>, vector<10x128xf32>
    %cst_12 = arith.constant dense<0.000000e+00> : vector<128xf32>
    %38 = vector.multi_reduction <add>, %37, %cst_12 [0] : vector<10x128xf32> to vector<128xf32>
    %39 = vector.shape_cast %38 : vector<128xf32> to vector<1x128xf32>
    %40 = arith.mulf %26, %39 : vector<1x128xf32>
    %c128_i32 = arith.constant 128 : i32
    %41 = arith.muli %arg0, %c128_i32 : i32
    %42 = tpu.iota {dimensions = array<i32: 1>} : vector<1x128xi32>
    %43 = vector.broadcast %41 : i32 to vector<1x128xi32>
    %44 = arith.addi %42, %43 : vector<1x128xi32>
    %c8_i32 = arith.constant 8 : i32
    %45 = vector.broadcast %c8_i32 : i32 to vector<1x128xi32>
    %46 = arith.cmpi slt, %44, %45 : vector<1x128xi32>
    %cst_13 = arith.constant 0.000000e+00 : f32
    %47 = vector.broadcast %cst_13 : f32 to vector<1x128xf32>
    %48 = arith.select %46, %40, %47 : vector<1x128xi1>, vector<1x128xf32>
    %c0_14 = arith.constant 0 : index
    %c0_15 = arith.constant 0 : index
    %49 = vector.load %arg3[%c0_14, %c0_15] : memref<1x128xf32, #tpu.memory_space<vmem>>, vector<1x128xf32>
    tpu.vector_store %arg3[%c0_14, %c0_15], %48 {strides = array<i32>} : memref<1x128xf32, #tpu.memory_space<vmem>>, vector<1x128xf32>,
    return
  }
  func.func @transform_0(%arg0: i32) -> (i32, i32) {
    %c0_i32 = arith.constant 0 : i32
    %c0_i32_0 = arith.constant 0 : i32
    return %c0_i32, %arg0 : i32, i32
  }
  func.func @transform_1(%arg0: i32) -> (i32, i32) {
    %c0_i32 = arith.constant 0 : i32
    %c0_i32_0 = arith.constant 0 : i32
    return %c0_i32, %arg0 : i32, i32
  }
  func.func @transform_2(%arg0: i32) -> (i32, i32) {
    %c0_i32 = arith.constant 0 : i32
    %c0_i32_0 = arith.constant 0 : i32
    return %c0_i32, %arg0 : i32, i32
  }
}

</mosaic_0001>

<bundles_post_ra>
// kernel: tpu_custom_call.1
= control target key start
LH: loop header
LB: loop body
LE: loop exit
PB: predicated region body
PF: predicated region fallthrough
CT: control target
= control target key end

     0   :  { %7 = vsyncpa [#allocation3], 0  ;;  %s342_s0 = inlined_call_operand.hbm [shape: f32[10,128], index: 0, kind: input, shape index: {}]   ;;  %s343_s1 = inlined_call_operand.hbm [shape: s32[1,128], index: 1, kind: input, shape index: {}]   ;;  %s344_s2 = inlined_call_operand.hbm [shape: f32[1,128], index: 2, kind: output, shape index: {}]  }
   0x1   :  { %8 = vsyncpa [#allocation6], 0 }
   0x2   :  { %9 = vsyncpa [#allocation4], 0  ;;  %s14_s11 = sshll.u32 %s342_s0, 4  ;;  %s266_s12 = smov [#allocation2]   ;;  %s15_s11 = int_to_ptr.hbm [resolvable:$true] %s14_s11 }
   0x3   :  { %s16_s13 = sshll.u32 %s266_s12, 4  ;;  %s28_s16 = sshll.u32 %s343_s1, 4  ;;  %s17_s13 = int_to_ptr.vmem [resolvable:$true] %s16_s13  ;;  %s29_s16 = int_to_ptr.hbm [resolvable:$true] %s28_s16 }
   0x4   :  { %s267_s17 = smov 128   ;;  %s268_s18 = smov 8  }
   0x5   :  { %22 = dma.hbm_to_vmem [thread:$0]  %s15_s11, 256, %s17_s13, [#allocation3], %s267_s17, %s267_s17, %s268_s18  }
   0x6   :  { %s269_s19 = smov [#allocation5]  }
   0x7   :  { %s30_s20 = sshll.u32 %s269_s19, 4  ;;  %s31_s20 = int_to_ptr.vmem [resolvable:$true] %s30_s20 }
   0x8   :  { %33 = dma.hbm_to_vmem [thread:$0]  %s29_s16, 16, %s31_s20, [#allocation6]  }
   0x9   :  { %260 = dma.done.wait [#allocation3], 256  }
   0xa   :  { %261 = vsyncadd [#allocation3], 4294967040 }
   0xb   :  { %262 = dma.done.wait [#allocation6], 16  }
   0xc   :  { %263 = vsyncadd [#allocation6], 4294967280  ;;  %vm45_vm0 = vcmask 1041408   ;;  %v42_v0 = vld [vmem:[#allocation2] sm:$0xff]  ;;  %v43_v1 = vld [vmem:[#allocation2 + $0x8] sm:$0x3]  ;;  %v68_v9 = vlaneseq }
   0xd   :  { %v46_v2 = vsel %vm45_vm0, %v43_v1, -inf  ;;  %v305_v17 = vld [vmem:[#allocation5] ss:$0 sm:$0xff]  ;;  %s270_s0 = smov [#allocation7]   ;;  %s157_s23 = sshll.u32 %s344_s2, 4  ;;  %s158_s23 = int_to_ptr.hbm [resolvable:$true] %s157_s23 }
   0xe   :  { %v47_v3 = vmax.f32 %v42_v0, %v46_v2  ;;  %v298_v13 = vshrl.u32 %v68_v9, 7  ;;  %s155_s1 = sshll.u32 %s270_s0, 4  ;;  %s156_s1 = int_to_ptr.vmem [resolvable:$true] %s155_s1 }
  0x10   :  { %v48_v4 = vrot.slane %v47_v3, 4  ;;  %v303_v16 = vadd.s32 8, %v298_v13  ;;  %vm72_vm1 = vcmp.eq.s32.totalorder %v298_v13, %v305_v17 }
  0x12   :  { %v49_v5 = vmax.f32 %v47_v3, %v48_v4  ;;  %vm73_vm2 = vcmp.eq.s32.totalorder %v303_v16, %v305_v17 }
  0x14   :  { %v50_v6 = vrot.slane %v49_v5, 2 }
  0x16   :  { %v51_v7 = vmax.f32 %v49_v5, %v50_v6 }
  0x18   :  { %v52_v8 = vrot.slane %v51_v7, 1 }
  0x1a   :  { %v53_v10 = vmax.f32 %v51_v7, %v52_v8 }
  0x1c   :  { %v293_v11 = vsub.f32 %v42_v0, %v53_v10  ;;  %v295_v12 = vsub.f32 %v43_v1, %v53_v10 }
  0x1e   :  { %v56_v14 = vmul.f32 1.442695, %v293_v11  ;;  %v58_v15 = vmul.f32 1.442695, %v295_v12 }
  0x20   :  { %174 = vpow2.f32 %v56_v14 }
  0x21   :  { %176 = vpow2.f32 %v58_v15 }
  0x26   :  { %v311_v18 = vpop.eup %174 }
  0x27   :  { %v313_v19 = vpop.eup %176  ;;  %v74_v21 = vsel %vm72_vm1, %v311_v18, 0.0 }
  0x28   :  { %v60_v20 = vsel %vm45_vm0, %v313_v19, 0.0  ;;  %v75_v22 = vsel %vm73_vm2, %v313_v19, 0.0 }
  0x29   :  { %v61_v23 = vadd.f32 %v311_v18, %v60_v20  ;;  %v76_v24 = vsel %vm45_vm0, %v75_v22, 0.0 }
  0x2a   :  { %v77_v26 = vadd.f32 %v76_v24, %v74_v21 }
  0x2b   :  { %v62_v25 = vrot.slane %v61_v23, 4 }
  0x2c   :  { %v78_v29 = vrot.slane %v77_v26, 4 }
  0x2d   :  { %v63_v27 = vadd.f32 %v62_v25, %v61_v23  ;;  %v144_v23 = vand.u32 127, %v68_v9 }
  0x2e   :  { %v79_v32 = vadd.f32 %v78_v29, %v77_v26 }
  0x2f   :  { %v64_v28 = vrot.slane %v63_v27, 2  ;;  %vm147_vm11 = vcmp.lt.s32.totalorder %v144_v23, 8 }
  0x30   :  { %v80_v34 = vrot.slane %v79_v32, 2 }
  0x31   :  { %v65_v30 = vadd.f32 %v64_v28, %v63_v27 }
  0x32   :  { %v81_v35 = vadd.f32 %v80_v34, %v79_v32 }
  0x33   :  { %v66_v31 = vrot.slane %v65_v30, 1 }
  0x34   :  { %v82_v38 = vrot.slane %v81_v35, 1 }
  0x35   :  { %v67_v33 = vadd.f32 %v66_v31, %v65_v30 }
  0x36   :  { %v83_v44 = vadd.f32 %v82_v38, %v81_v35 }
  0x37   :  { %178 = vrcp.f32 %v67_v33  ;;  %v95_v39 = vand.u32 2147483648, %v67_v33  ;;  %vm89_vm3 = vweird.f32 %v67_v33  ;;  %v93_v41 = vand.u32 2147483647, %v67_v33 }
  0x39   :  { %v96_v43 = vor.u32 1.1754944e-38, %v95_v39  ;;  %vm94_vm6 = vcmp.eq.f32.partialorder %v93_v41, 8.507059e+37 }
  0x3d   :  { %v179_v36 = vpop.eup %178 }
  0x3e   :  { %v85_v37 = vmul.f32 %v179_v36, %v67_v33  ;;  %vm90_vm4 = vweird.f32 %v179_v36 }
  0x3f   :  { %vm91_vm5 = vmor %vm89_vm3, %vm90_vm4 }
  0x40   :  { %v86_v40 = vsub.f32 1.0, %v85_v37 }
  0x42   :  { %v87_v42 = vmul.f32 %v179_v36, %v86_v40 }
  0x44   :  { %v88_v45 = vadd.f32 %v179_v36, %v87_v42 }
  0x46   :  { %v92_v46 = vsel %vm91_vm5, %v179_v36, %v88_v45 }
  0x47   :  { %v97_v47 = vsel %vm94_vm6, %v96_v43, %v92_v46 }
  0x48   :  { %v98_v48 = vmul.f32 %v97_v47, %v83_v44 }
  0x4a   :  { %v99_v49 = vsub.f32 1.0, %v98_v48  ;;  %v101_v52 = vadd.f32 1e-07, %v98_v48 }
  0x4c   :  { %v100_v50 = vadd.f32 1e-07, %v99_v49 }
  0x4e   :  { %v107_v51 = vmul.f32 %v100_v50, %v67_v33 }
  0x50   :  { %180 = vrcp.f32 %v107_v51  ;;  %v119_v56 = vand.u32 2147483648, %v107_v51  ;;  %vm113_vm7 = vweird.f32 %v107_v51  ;;  %v117_v58 = vand.u32 2147483647, %v107_v51 }
  0x51   :  { %182 = vlog2.f32 %v107_v51 }
  0x52   :  { %184 = vlog2.f32 %v101_v52  ;;  %v120_v61 = vor.u32 1.1754944e-38, %v119_v56  ;;  %vm118_vm10 = vcmp.eq.f32.partialorder %v117_v58, 8.507059e+37 }
  0x56   :  { %v181_v53 = vpop.eup %180 }
  0x57   :  { %v109_v54 = vmul.f32 %v181_v53, %v107_v51  ;;  %v183_v55 = vpop.eup %182  ;;  %vm114_vm8 = vweird.f32 %v181_v53 }
  0x58   :  { %v124_v60 = vmul.f32 0.6931472, %v183_v55  ;;  %vm115_vm9 = vmor %vm113_vm7, %vm114_vm8  ;;  %v185_v62 = vpop.eup %184 }
  0x59   :  { %v110_v57 = vsub.f32 1.0, %v109_v54  ;;  %v103_v3 = vmul.f32 0.6931472, %v185_v62 }
  0x5a   :  { %v127_v1 = vsub.f32 %v293_v11, %v124_v60  ;;  %v128_v2 = vsub.f32 %v295_v12, %v124_v60 }
  0x5b   :  { %v111_v59 = vmul.f32 %v181_v53, %v110_v57  ;;  %v104_v10 = vmul.f32 0.333, %v103_v3 }
  0x5d   :  { %v112_v63 = vadd.f32 %v181_v53, %v111_v59  ;;  %v105_v20 = vmul.f32 1.442695, %v104_v10 }
  0x5f   :  { %v116_v0 = vsel %vm115_vm9, %v181_v53, %v112_v63  ;;  %186 = vpow2.f32 %v105_v20 }
  0x60   :  { %v121_v4 = vsel %vm118_vm10, %v120_v61, %v116_v0 }
  0x61   :  { %v125_v5 = vmul.f32 %v311_v18, %v121_v4  ;;  %v126_v6 = vmul.f32 %v313_v19, %v121_v4 }
  0x63   :  { %v129_v7 = vmul.f32 %v127_v1, %v125_v5  ;;  %v130_v8 = vmul.f32 %v128_v2, %v126_v6 }
  0x65   :  { %v131_v14 = vsel %vm72_vm1, 0.0, %v129_v7  ;;  %v132_v15 = vsel %vm73_vm2, 0.0, %v130_v8  ;;  %v187_v25 = vpop.eup %186 }
  0x66   :  { %v133_v11 = vsel %vm45_vm0, %v132_v15, 0.0 }
  0x67   :  { %v134_v12 = vadd.f32 %v133_v11, %v131_v14 }
  0x69   :  { %v135_v21 = vrot.slane %v134_v12, 4 }
  0x6b   :  { %v136_v22 = vadd.f32 %v135_v21, %v134_v12 }
  0x6d   :  { %v137_v18 = vrot.slane %v136_v22, 2 }
  0x6f   :  { %v138_v19 = vadd.f32 %v137_v18, %v136_v22 }
  0x71   :  { %v139_v24 = vrot.slane %v138_v19, 1 }
  0x73   :  { %v140_v26 = vadd.f32 %v139_v24, %v138_v19 }
  0x75   :  { %v141_v13 = vmul.f32 %v187_v25, %v140_v26 }
  0x77   :  { %v148_v16 = vsel %vm147_vm11, %v141_v13, 0.0 }
  0x78   :  { %149 = vst [vmem:[#allocation7] sm:$0x1] %v148_v16 }
  0x79   :  { %160 = dma.vmem_to_hbm [thread:$0]  %s156_s1, 16, %s158_s23, [#allocation4]  }
  0x7a   :  { %264 = dma.done.wait [#allocation4], 16  }
  0x7b   :  { %265 = vsyncadd [#allocation4], 4294967280 }
  0x7c   :  { %165 = vsyncpa [#allocation3], 1 }
  0x7d   :  { %166 = vsyncpa [#allocation6], 1 }
  0x7e   :  { %167 = vsyncpa [#allocation4], 1 }

</bundles_post_ra>
